<compile_context>
chip_gen: v7x
topology: tpu7x:2x2x1
jax: 0.10.0
libtpu: 0.0.40
codegen_flags: <defaults>
</compile_context>

<pallas_src>
import functools
import math

import jax
import jax.numpy as jnp
import numpy as np
from jax import lax
from jax.experimental import pallas as pl
from jax.experimental.pallas import tpu as pltpu


# ----------------------------- Pallas kernel --------------------------------
def _lstm_recurrence_kernel(gx_ref, whh0_ref, wfused_ref, b_ref, hout_ref,
                            h_scr, c_scr, *, num_layers, hidden_size, steps,
                            unroll):
    """Serial multi-layer LSTM recurrence over one chunk of `steps` time steps.

    gx_ref     : (T, Bblk, 4H)        precomputed layer-0 gates (BN + x@W_ih0 + b0)
    whh0_ref   : (H, 4H)              layer-0 recurrent weights
    wfused_ref : (max(L-1,1), 2H, 4H) fused [W_ih ; W_hh] weights, layers 1..L-1
    b_ref      : (max(L-1,1), 1, 4H)  f32 biases, layers 1..L-1
    hout_ref   : (T, Bblk, H)         top-layer hidden states (output)
    h_scr/c_scr: (L, Bblk, H) f32     recurrent carry, persists across grid steps
    """
    H = hidden_size
    L = num_layers
    cdt = whh0_ref.dtype                       # MXU operand dtype (bf16 on TPU)
    Bblk = h_scr.shape[1]

    # Zero-init the recurrent carry at the start of each batch shard's time loop.
    @pl.when(pl.program_id(1) == 0)
    def _():
        h_scr[...] = jnp.zeros_like(h_scr)
        c_scr[...] = jnp.zeros_like(c_scr)

    # Loop-invariant weight / bias loads hoisted out of the time loop.
    whh0 = whh0_ref[...]
    wfused = [wfused_ref[l] for l in range(L - 1)]
    b_rows = [jnp.broadcast_to(b_ref[l], (Bblk, 4 * H)) for l in range(L - 1)]

    def gate_math(gates, c_prev):
        # Packed gate order (i, f, o, g): one sigmoid slab + one tanh slab.
        sig = jax.nn.sigmoid(gates[:, :3 * H])
        i_g = sig[:, 0 * H:1 * H]
        f_g = sig[:, 1 * H:2 * H]
        o_g = sig[:, 2 * H:3 * H]
        g_g = jnp.tanh(gates[:, 3 * H:])
        c_new = f_g * c_prev + i_g * g_g
        h_new = o_g * jnp.tanh(c_new)
        return h_new, c_new

    def one_step(t, carry):
        hs, cs = carry
        new_hs, new_cs = [], []

        # Layer 0: input projection precomputed in gx; one recurrent matmul.
        gates = gx_ref[t].astype(jnp.float32) + jnp.dot(
            hs[0].astype(cdt), whh0, preferred_element_type=jnp.float32)
        h_new, c_new = gate_math(gates, cs[0])
        new_hs.append(h_new)
        new_cs.append(c_new)
        layer_in = h_new

        # Layers 1..L-1: fused [x_t ; h_{t-1}] @ [W_ih ; W_hh] -> one MXU issue.
        for l in range(1, L):
            inp = jnp.concatenate([layer_in, hs[l]], axis=-1).astype(cdt)
            gates = jnp.dot(inp, wfused[l - 1],
                            preferred_element_type=jnp.float32) + b_rows[l - 1]
            h_new, c_new = gate_math(gates, cs[l])
            new_hs.append(h_new)
            new_cs.append(c_new)
            layer_in = h_new

        hout_ref[t] = layer_in.astype(hout_ref.dtype)
        return (tuple(new_hs), tuple(new_cs))

    # Bounded unroll: outer loop over steps/unroll, Python-unrolled inner body
    # (keeps LLO scheduling visibility without full-unroll vreg pressure).
    def block(j, carry):
        for u in range(unroll):
            carry = one_step(j * unroll + u, carry)
        return carry

    h0 = tuple(h_scr[l] for l in range(L))
    c0 = tuple(c_scr[l] for l in range(L))
    hs, cs = lax.fori_loop(0, steps // unroll, block, (h0, c0))

    # Persist the carry for the next time chunk.
    for l in range(L):
        h_scr[l] = hs[l]
        c_scr[l] = cs[l]


# ------------------------------ JAX wrapper ---------------------------------
def _reorder_gates(w, H):
    """Repack the 4H gate axis from PyTorch (i, f, g, o) to (i, f, o, g)."""
    return jnp.concatenate([w[..., :2 * H], w[..., 3 * H:], w[..., 2 * H:3 * H]],
                           axis=-1)


def _constant_block_spec(shape, index_map):
    """BlockSpec for operands whose block index never changes across the grid.

    Single-buffering them (pl.Buffered(1)) halves their VMEM residency; falls
    back silently on JAX versions without pipeline_mode support.
    """
    try:
        return pl.BlockSpec(shape, index_map, pipeline_mode=pl.Buffered(1))
    except (AttributeError, TypeError):
        return pl.BlockSpec(shape, index_map)


def sequence_decoder_forward(inputs, params, initial_state=None, *,
                             time_chunk=16, batch_shards=1, unroll=2,
                             compute_dtype=None):
    """inputs: tuple of (B, S, F_i) arrays concatenated on the last axis."""
    if initial_state is not None:
        # TODO(synk): initial_state / return_states are not plumbed through the
        # Pallas path (module default: zero initial state, return out only).
        raise NotImplementedError("initial_state not supported by Pallas path")

    # bf16 MXU operands (f32 accumulation) on TPU; plain f32 elsewhere
    # (bf16 x bf16 -> f32 dots are unsupported by the CPU dot executor).
    if compute_dtype is None:
        compute_dtype = (jnp.bfloat16 if jax.default_backend() == "tpu"
                         else jnp.float32)
    cdt = compute_dtype

    x = jnp.concatenate(inputs, axis=-1).astype(jnp.float32)        # (B, S, F)
    B, S, F = x.shape

    whh = params["whh_T"]                                           # (L, H, 4H)
    L, H, _ = whh.shape
    eps = 1e-3   # module spec: nn.BatchNorm1d(..., eps=0.001), training-mode stats

    # ---- training-mode BatchNorm statistics over (B*S, F) (tiny reduction) --
    flat = x.reshape(B * S, F)
    mean = jnp.mean(flat, axis=0)
    var = jnp.mean((flat - mean) ** 2, axis=0)                      # biased
    inv_std = 1.0 / jnp.sqrt(var + eps)
    scale = params["bn_gamma"] * inv_std                            # (F,)
    shift = params["bn_beta"] - mean * scale                        # (F,)

    # ---- repack gates (i,f,g,o)->(i,f,o,g) and fold BN into layer 0 ---------
    wih0 = _reorder_gates(params["wih0_T"], H)                      # (F, 4H)
    whh_r = _reorder_gates(whh, H)                                  # (L, H, 4H)
    b_r = _reorder_gates(params["b"], H)                            # (L, 1, 4H)

    w0_eff = scale[:, None] * wih0                                  # (F, 4H)
    b0_eff = shift @ wih0 + b_r[0, 0]                               # (4H,)

    whh0 = whh_r[0].astype(cdt)                                     # (H, 4H)
    if L > 1:
        wih_rest = _reorder_gates(params["wih_rest_T"], H)          # (L-1, H, 4H)
        # Fused per-layer weight [W_ih ; W_hh] -> one in-kernel dot per layer.
        wfused = jnp.concatenate([wih_rest, whh_r[1:]], axis=1).astype(cdt)
        b_rest = b_r[1:]                                            # (L-1, 1, 4H)
    else:                                  # guard zero-size leading dim (L==1)
        wfused = jnp.zeros((1, 2 * H, 4 * H), cdt)                  # never read
        b_rest = jnp.zeros((1, 1, 4 * H), jnp.float32)

    # ---- hoisted layer-0 input projection for ALL time steps: transpose x
    #      once (the small tensor) so the big matmul writes gx time-major
    #      directly, no transpose of the larger gx intermediate. -------------
    xt = jnp.transpose(x, (1, 0, 2))                                # (S, B, F)
    gx = jnp.einsum("sbf,fg->sbg", xt.astype(cdt), w0_eff.astype(cdt),
                    preferred_element_type=jnp.float32) + b0_eff    # (S, B, 4H)
    gx = gx.astype(cdt)            # streaming HBM traffic in compute dtype

    # ---- time chunking: pad tail; trailing garbage never feeds back (causal)
    T = max(1, min(time_chunk, S))
    n_chunks = -(-S // T)
    S_pad = n_chunks * T
    if S_pad != S:
        gx = jnp.pad(gx, ((0, S_pad - S), (0, 0), (0, 0)))
    unroll_eff = max(1, math.gcd(max(int(unroll), 1), T))

    assert B % batch_shards == 0, "batch_shards must divide batch size"
    Bblk = B // batch_shards
    if batch_shards > 1:
        min_b = 16 if jnp.dtype(cdt).itemsize == 2 else 8
        assert Bblk % min_b == 0, (
            f"B/batch_shards must be a multiple of {min_b} (got {Bblk})")
    Lm1 = max(L - 1, 1)
    # TODO(synk): at production sizes pad H to a multiple of 128 so gate slices
    # stay lane-tile aligned and hout stores are unmasked vst.

    # ---- scoped VMEM budget from the actual block footprint -----------------
    isz = jnp.dtype(cdt).itemsize
    weight_bytes = (H * 4 * H + Lm1 * 2 * H * 4 * H) * isz + Lm1 * 4 * H * 4
    stream_bytes = 2 * (T * Bblk * 4 * H * isz + T * Bblk * H * isz)  # dbl-buf
    scratch_bytes = 2 * L * Bblk * H * 4
    need = weight_bytes + stream_bytes + scratch_bytes
    vmem_limit = int(min(64 << 20, max(32 << 20, 2 * need + (4 << 20))))

    kernel = functools.partial(_lstm_recurrence_kernel, num_layers=L,
                               hidden_size=H, steps=T, unroll=unroll_eff)

    h_top = pl.pallas_call(
        kernel,
        out_shape=jax.ShapeDtypeStruct((S_pad, B, H), cdt),
        grid_spec=pltpu.PrefetchScalarGridSpec(
            num_scalar_prefetch=0,
            grid=(batch_shards, n_chunks),               # time axis innermost
            in_specs=[
                pl.BlockSpec((T, Bblk, 4 * H), lambda p, i: (i, p, 0)),    # gx
                _constant_block_spec((H, 4 * H), lambda p, i: (0, 0)),     # W_hh0
                _constant_block_spec((Lm1, 2 * H, 4 * H),
                                     lambda p, i: (0, 0, 0)),              # fused W
                _constant_block_spec((Lm1, 1, 4 * H),
                                     lambda p, i: (0, 0, 0)),              # biases
            ],
            out_specs=pl.BlockSpec((T, Bblk, H), lambda p, i: (i, p, 0)),
            scratch_shapes=[
                pltpu.VMEM((L, Bblk, H), jnp.float32),   # h carry
                pltpu.VMEM((L, Bblk, H), jnp.float32),   # c carry
            ],
        ),
        compiler_params=pltpu.CompilerParams(
            dimension_semantics=("parallel", "arbitrary"),
            vmem_limit_bytes=vmem_limit),
    )(gx, whh0, wfused, b_rest)

    h_top = h_top[:S]                                               # (S, B, H)

    # ---- hoisted output projection: one (S*B, H) x (H, O) matmul ------------
    out = jnp.einsum("sbh,ho->sbo", h_top.astype(cdt),
                     params["wd_T"].astype(cdt),
                     preferred_element_type=jnp.float32)
    out = jnp.transpose(out, (1, 0, 2)) + params["bd"]              # (B, S, O)
    return out


# --------------------- deterministic parameter init --------------------------
def init_params(key, input_size, hidden_size, output_size, num_layers):
    H, F, O, L = hidden_size, input_size, output_size, num_layers
    keys = jax.random.split(key, 2 * L + 1)

    def xavier(k, shape):
        fan_out, fan_in = shape
        limit = np.sqrt(6.0 / (fan_in + fan_out))
        return jax.random.uniform(k, shape, jnp.float32, -limit, limit)

    def orthogonal(k, shape):
        a = jax.random.normal(k, shape, jnp.float32)
        q, _ = jnp.linalg.qr(a)
        return q[: shape[0], : shape[1]]

    wih_T, whh_T = [], []
    for l in range(L):
        in_dim = F if l == 0 else H
        w_ih = xavier(keys[2 * l], (4 * H, in_dim))       # PyTorch (4H, in)
        w_hh = orthogonal(keys[2 * l + 1], (4 * H, H))    # PyTorch (4H, H)
        wih_T.append(w_ih.T)                              # (in, 4H)
        whh_T.append(w_hh.T)                              # (H, 4H)

    wd = xavier(keys[-1], (O, H))                         # PyTorch (O, H)

    return {
        "bn_gamma": jnp.ones((F,), jnp.float32),
        "bn_beta": jnp.zeros((F,), jnp.float32),
        "wih0_T": wih_T[0],                               # (F, 4H)
        "wih_rest_T": (jnp.stack(wih_T[1:], axis=0) if L > 1
                       else jnp.zeros((0, H, 4 * H), jnp.float32)),
        "whh_T": jnp.stack(whh_T, axis=0),                # (L, H, 4H)
        "b": jnp.zeros((L, 1, 4 * H), jnp.float32),       # b_ih + b_hh = 0
        "wd_T": wd.T,                                     # (H, O)
        "bd": jnp.zeros((1, O), jnp.float32),
    }


# ---------------------------- pure-JAX reference -----------------------------
def reference_forward(inputs, params):
    """Faithful f32 reference: BN (training stats) -> LSTM (i,f,g,o) -> dense."""
    x = jnp.concatenate(inputs, axis=-1).astype(jnp.float32)
    B, S, F = x.shape
    eps = 1e-3
    flat = x.reshape(B * S, F)
    mean = jnp.mean(flat, axis=0)
    var = jnp.mean((flat - mean) ** 2, axis=0)
    xn = (x - mean) / jnp.sqrt(var + eps) * params["bn_gamma"] + params["bn_beta"]

    whh = params["whh_T"]
    L, H, _ = whh.shape
    h = jnp.zeros((L, B, H), jnp.float32)
    c = jnp.zeros((L, B, H), jnp.float32)

    def step(carry, x_t):
        h, c = carry
        layer_in = x_t
        hs, cs = [], []
        for l in range(L):
            w_ih = params["wih0_T"] if l == 0 else params["wih_rest_T"][l - 1]
            gates = layer_in @ w_ih + h[l] @ whh[l] + params["b"][l][0]
            i_g = jax.nn.sigmoid(gates[:, 0 * H:1 * H])
            f_g = jax.nn.sigmoid(gates[:, 1 * H:2 * H])
            g_g = jnp.tanh(gates[:, 2 * H:3 * H])
            o_g = jax.nn.sigmoid(gates[:, 3 * H:4 * H])
            c_new = f_g * c[l] + i_g * g_g
            h_new = o_g * jnp.tanh(c_new)
            hs.append(h_new)
            cs.append(c_new)
            layer_in = h_new
        return (jnp.stack(hs), jnp.stack(cs)), layer_in

    (_, _), top = lax.scan(step, (h, c), jnp.transpose(xn, (1, 0, 2)))
    out = top @ params["wd_T"] + params["bd"][0]          # (S, B, O)
    return jnp.transpose(out, (1, 0, 2))


# ---------------------------------- main -------------------------------------
if __name__ == "__main__":
    # Small shapes consistent with the module: input = hidden + aux + vocab.
    B, S = 2, 8
    H, O, L = 32, 16, 3
    F = H + 8 + 8          # 48 (mimics the 256 + 11 + 39 concat structure)

    key = jax.random.PRNGKey(0)
    kp, ka, kb = jax.random.split(key, 3)

    params = init_params(kp, F, H, O, L)

    # `inputs` is a tuple of tensors concatenated on the last dim (as in forward).
    x_a = jax.random.normal(ka, (B, S, H + 8), jnp.float32)
    x_b = jax.random.normal(kb, (B, S, 8), jnp.float32)
    inputs = (x_a, x_b)

    out = sequence_decoder_forward(inputs, params)
    out = jax.block_until_ready(out)

    ref = jax.block_until_ready(reference_forward(inputs, params))
    # bf16 MXU operands on TPU (f32 accumulation) vs the pure-f32 reference.
    np.testing.assert_allclose(np.asarray(out), np.asarray(ref),
                               rtol=5e-2, atol=5e-2)

    assert out.shape == (B, S, O)
    print("KERNEL_OK")
</pallas_src>

<mosaic_0001>
module attributes {stable_mosaic.version = 11 : i64} {
  func.func @_lstm_recurrence_kernel(%arg0: i32, %arg1: i32, %arg2: memref<8x2x128xf32, #tpu.memory_space<vmem>>, %arg3: memref<32x128xf32, #tpu.memory_space<vmem>>, %arg4: memref<2x64x128xf32, #tpu.memory_space<vmem>>, %arg5: memref<2x1x128xf32, #tpu.memory_space<vmem>>, %arg6: memref<8x2x32xf32, #tpu.memory_space<vmem>>, %arg7: memref<3x2x32xf32, #tpu.memory_space<vmem>>, %arg8: memref<3x2x32xf32, #tpu.memory_space<vmem>>) attributes {dimension_semantics = [#tpu.dimension_semantics<parallel>, #tpu.dimension_semantics<arbitrary>], iteration_bounds = array<i64: 1, 1>, scalar_prefetch = 0 : i64, scratch_operands = 2 : i64, tpu.core_type = #tpu.core_type<tc>, window_params = [{transform_indices = @transform_0, window_bounds = array<i64: 8, 2, 128>}, {pipeline_mode = #tpu.pipeline_mode<synchronous>, transform_indices = @transform_1, window_bounds = array<i64: 32, 128>}, {pipeline_mode = #tpu.pipeline_mode<synchronous>, transform_indices = @transform_2, window_bounds = array<i64: 2, 64, 128>}, {pipeline_mode = #tpu.pipeline_mode<synchronous>, transform_indices = @transform_3, window_bounds = array<i64: 2, 1, 128>}, {transform_indices = @transform_4, window_bounds = array<i64: 8, 2, 32>}]} {
    %c0_i32 = arith.constant 0 : i32
    %0 = arith.cmpi eq, %arg1, %c0_i32 : i32
    %1 = arith.extui %0 : i1 to i32
    %c0_i32_0 = arith.constant 0 : i32
    %2 = arith.cmpi ne, %1, %c0_i32_0 : i32
    scf.if %2 {
      %cst = arith.constant 0.000000e+00 : f32
      %48 = vector.broadcast %cst : f32 to vector<3x2x32xf32>
      %c0_50 = arith.constant 0 : index
      %c0_51 = arith.constant 0 : index
      %c0_52 = arith.constant 0 : index
      %49 = vector.load %arg7[%c0_50, %c0_51, %c0_52] : memref<3x2x32xf32, #tpu.memory_space<vmem>>, vector<3x2x32xf32>
      tpu.vector_store %arg7[%c0_50, %c0_51, %c0_52], %48 {strides = array<i32>} : memref<3x2x32xf32, #tpu.memory_space<vmem>>, vector<3x2x32xf32>,
      %cst_53 = arith.constant 0.000000e+00 : f32
      %50 = vector.broadcast %cst_53 : f32 to vector<3x2x32xf32>
      %c0_54 = arith.constant 0 : index
      %c0_55 = arith.constant 0 : index
      %c0_56 = arith.constant 0 : index
      %51 = vector.load %arg8[%c0_54, %c0_55, %c0_56] : memref<3x2x32xf32, #tpu.memory_space<vmem>>, vector<3x2x32xf32>
      tpu.vector_store %arg8[%c0_54, %c0_55, %c0_56], %50 {strides = array<i32>} : memref<3x2x32xf32, #tpu.memory_space<vmem>>, vector<3x2x32xf32>,
    } else {
    }
    %c0 = arith.constant 0 : index
    %c0_1 = arith.constant 0 : index
    %3 = vector.load %arg3[%c0, %c0_1] : memref<32x128xf32, #tpu.memory_space<vmem>>, vector<32x128xf32>
    %c0_2 = arith.constant 0 : index
    %c0_3 = arith.constant 0 : index
    %c0_4 = arith.constant 0 : index
    %4 = vector.load %arg4[%c0_2, %c0_3, %c0_4] : memref<2x64x128xf32, #tpu.memory_space<vmem>>, vector<1x64x128xf32>
    %5 = vector.shape_cast %4 : vector<1x64x128xf32> to vector<64x128xf32>
    %c1 = arith.constant 1 : index
    %c0_5 = arith.constant 0 : index
    %c0_6 = arith.constant 0 : index
    %6 = vector.load %arg4[%c1, %c0_5, %c0_6] : memref<2x64x128xf32, #tpu.memory_space<vmem>>, vector<1x64x128xf32>
    %7 = vector.shape_cast %6 : vector<1x64x128xf32> to vector<64x128xf32>
    %c0_7 = arith.constant 0 : index
    %c0_8 = arith.constant 0 : index
    %c0_9 = arith.constant 0 : index
    %8 = vector.load %arg5[%c0_7, %c0_8, %c0_9] : memref<2x1x128xf32, #tpu.memory_space<vmem>>, vector<1x1x128xf32>
    %9 = vector.shape_cast %8 : vector<1x1x128xf32> to vector<1x128xf32>
    %10 = vector.shape_cast %9 : vector<1x128xf32> to vector<1x128xf32>
    %11 = vector.broadcast %10 : vector<1x128xf32> to vector<2x128xf32>
    %c1_10 = arith.constant 1 : index
    %c0_11 = arith.constant 0 : index
    %c0_12 = arith.constant 0 : index
    %12 = vector.load %arg5[%c1_10, %c0_11, %c0_12] : memref<2x1x128xf32, #tpu.memory_space<vmem>>, vector<1x1x128xf32>
    %13 = vector.shape_cast %12 : vector<1x1x128xf32> to vector<1x128xf32>
    %14 = vector.shape_cast %13 : vector<1x128xf32> to vector<1x128xf32>
    %15 = vector.broadcast %14 : vector<1x128xf32> to vector<2x128xf32>
    %c0_13 = arith.constant 0 : index
    %c0_14 = arith.constant 0 : index
    %c0_15 = arith.constant 0 : index
    %16 = vector.load %arg7[%c0_13, %c0_14, %c0_15] : memref<3x2x32xf32, #tpu.memory_space<vmem>>, vector<1x2x32xf32>
    %17 = vector.shape_cast %16 : vector<1x2x32xf32> to vector<2x32xf32>
    %c1_16 = arith.constant 1 : index
    %c0_17 = arith.constant 0 : index
    %c0_18 = arith.constant 0 : index
    %18 = vector.load %arg7[%c1_16, %c0_17, %c0_18] : memref<3x2x32xf32, #tpu.memory_space<vmem>>, vector<1x2x32xf32>
    %19 = vector.shape_cast %18 : vector<1x2x32xf32> to vector<2x32xf32>
    %c2 = arith.constant 2 : index
    %c0_19 = arith.constant 0 : index
    %c0_20 = arith.constant 0 : index
    %20 = vector.load %arg7[%c2, %c0_19, %c0_20] : memref<3x2x32xf32, #tpu.memory_space<vmem>>, vector<1x2x32xf32>
    %21 = vector.shape_cast %20 : vector<1x2x32xf32> to vector<2x32xf32>
    %c0_21 = arith.constant 0 : index
    %c0_22 = arith.constant 0 : index
    %c0_23 = arith.constant 0 : index
    %22 = vector.load %arg8[%c0_21, %c0_22, %c0_23] : memref<3x2x32xf32, #tpu.memory_space<vmem>>, vector<1x2x32xf32>
    %23 = vector.shape_cast %22 : vector<1x2x32xf32> to vector<2x32xf32>
    %c1_24 = arith.constant 1 : index
    %c0_25 = arith.constant 0 : index
    %c0_26 = arith.constant 0 : index
    %24 = vector.load %arg8[%c1_24, %c0_25, %c0_26] : memref<3x2x32xf32, #tpu.memory_space<vmem>>, vector<1x2x32xf32>
    %25 = vector.shape_cast %24 : vector<1x2x32xf32> to vector<2x32xf32>
    %c2_27 = arith.constant 2 : index
    %c0_28 = arith.constant 0 : index
    %c0_29 = arith.constant 0 : index
    %26 = vector.load %arg8[%c2_27, %c0_28, %c0_29] : memref<3x2x32xf32, #tpu.memory_space<vmem>>, vector<1x2x32xf32>
    %27 = vector.shape_cast %26 : vector<1x2x32xf32> to vector<2x32xf32>
    %c0_i32_30 = arith.constant 0 : i32
    %c4_i32 = arith.constant 4 : i32
    %28 = arith.addi %c0_i32_30, %c4_i32 : i32
    %c1_i32 = arith.constant 1 : i32
    %29:6 = scf.for %arg9 = %c0_i32_30 to %28 step %c1_i32 iter_args(%arg10 = %17, %arg11 = %19, %arg12 = %21, %arg13 = %23, %arg14 = %25, %arg15 = %27) -> (vector<2x32xf32>, vector<2x32xf32>, vector<2x32xf32>, vector<2x32xf32>, vector<2x32xf32>, vector<2x32xf32>)  : i32 {
      %c2_i32 = arith.constant 2 : i32
      %48 = arith.muli %arg9, %c2_i32 : i32
      %c0_i32_50 = arith.constant 0 : i32
      %49 = arith.addi %48, %c0_i32_50 : i32
      %50 = arith.index_cast %49 : i32 to index
      %c0_51 = arith.constant 0 : index
      %c0_52 = arith.constant 0 : index
      %51 = vector.load %arg2[%50, %c0_51, %c0_52] : memref<8x2x128xf32, #tpu.memory_space<vmem>>, vector<1x2x128xf32>
      %52 = vector.shape_cast %51 : vector<1x2x128xf32> to vector<2x128xf32>
      %cst = arith.constant dense<0.000000e+00> : vector<2x128xf32>
      %53 = tpu.matmul %arg10, %3, %cst {dimension_numbers = #tpu.dot_dimension_numbers<[1], [0], [0], [1], [0, 0, 1, 1], [], []>} : vector<2x32xf32>, vector<32x128xf32>, vector<2x128xf32> -> vector<2x128xf32>
      %54 = arith.addf %52, %53 : vector<2x128xf32>
      %55 = vector.extract_strided_slice %54 {offsets = [0, 0], sizes = [2, 96], strides = [1, 1]} : vector<2x128xf32> to vector<2x96xf32>
      %56 = arith.negf %55 : vector<2x96xf32>
      %57 = math.exp %56 : vector<2x96xf32>
      %cst_53 = arith.constant 1.000000e+00 : f32
      %58 = vector.broadcast %cst_53 : f32 to vector<2x96xf32>
      %59 = arith.addf %58, %57 : vector<2x96xf32>
      %60 = arith.divf %58, %59 : vector<2x96xf32>
      %61 = vector.extract_strided_slice %60 {offsets = [0, 0], sizes = [2, 32], strides = [1, 1]} : vector<2x96xf32> to vector<2x32xf32>
      %62 = vector.extract_strided_slice %60 {offsets = [0, 32], sizes = [2, 32], strides = [1, 1]} : vector<2x96xf32> to vector<2x32xf32>
      %63 = vector.extract_strided_slice %60 {offsets = [0, 64], sizes = [2, 32], strides = [1, 1]} : vector<2x96xf32> to vector<2x32xf32>
      %64 = vector.extract_strided_slice %54 {offsets = [0, 96], sizes = [2, 32], strides = [1, 1]} : vector<2x128xf32> to vector<2x32xf32>
      %65 = math.tanh %64 : vector<2x32xf32>
      %66 = arith.mulf %62, %arg13 : vector<2x32xf32>
      %67 = arith.mulf %61, %65 : vector<2x32xf32>
      %68 = arith.addf %66, %67 : vector<2x32xf32>
      %69 = math.tanh %68 : vector<2x32xf32>
      %70 = arith.mulf %63, %69 : vector<2x32xf32>
      %71 = tpu.concatenate %70, %arg11 in 1 : vector<2x32xf32>, vector<2x32xf32> -> vector<2x64xf32>
      %cst_54 = arith.constant dense<0.000000e+00> : vector<2x128xf32>
      %72 = tpu.matmul %71, %5, %cst_54 {dimension_numbers = #tpu.dot_dimension_numbers<[1], [0], [0], [1], [0, 0, 1, 1], [], []>} : vector<2x64xf32>, vector<64x128xf32>, vector<2x128xf32> -> vector<2x128xf32>
      %73 = arith.addf %72, %11 : vector<2x128xf32>
      %74 = vector.extract_strided_slice %73 {offsets = [0, 0], sizes = [2, 96], strides = [1, 1]} : vector<2x128xf32> to vector<2x96xf32>
      %75 = arith.negf %74 : vector<2x96xf32>
      %76 = math.exp %75 : vector<2x96xf32>
      %cst_55 = arith.constant 1.000000e+00 : f32
      %77 = vector.broadcast %cst_55 : f32 to vector<2x96xf32>
      %78 = arith.addf %77, %76 : vector<2x96xf32>
      %79 = arith.divf %77, %78 : vector<2x96xf32>
      %80 = vector.extract_strided_slice %79 {offsets = [0, 0], sizes = [2, 32], strides = [1, 1]} : vector<2x96xf32> to vector<2x32xf32>
      %81 = vector.extract_strided_slice %79 {offsets = [0, 32], sizes = [2, 32], strides = [1, 1]} : vector<2x96xf32> to vector<2x32xf32>
      %82 = vector.extract_strided_slice %79 {offsets = [0, 64], sizes = [2, 32], strides = [1, 1]} : vector<2x96xf32> to vector<2x32xf32>
      %83 = vector.extract_strided_slice %73 {offsets = [0, 96], sizes = [2, 32], strides = [1, 1]} : vector<2x128xf32> to vector<2x32xf32>
      %84 = math.tanh %83 : vector<2x32xf32>
      %85 = arith.mulf %81, %arg14 : vector<2x32xf32>
      %86 = arith.mulf %80, %84 : vector<2x32xf32>
      %87 = arith.addf %85, %86 : vector<2x32xf32>
      %88 = math.tanh %87 : vector<2x32xf32>
      %89 = arith.mulf %82, %88 : vector<2x32xf32>
      %90 = tpu.concatenate %89, %arg12 in 1 : vector<2x32xf32>, vector<2x32xf32> -> vector<2x64xf32>
      %cst_56 = arith.constant dense<0.000000e+00> : vector<2x128xf32>
      %91 = tpu.matmul %90, %7, %cst_56 {dimension_numbers = #tpu.dot_dimension_numbers<[1], [0], [0], [1], [0, 0, 1, 1], [], []>} : vector<2x64xf32>, vector<64x128xf32>, vector<2x128xf32> -> vector<2x128xf32>
      %92 = arith.addf %91, %15 : vector<2x128xf32>
      %93 = vector.extract_strided_slice %92 {offsets = [0, 0], sizes = [2, 96], strides = [1, 1]} : vector<2x128xf32> to vector<2x96xf32>
      %94 = arith.negf %93 : vector<2x96xf32>
      %95 = math.exp %94 : vector<2x96xf32>
      %cst_57 = arith.constant 1.000000e+00 : f32
      %96 = vector.broadcast %cst_57 : f32 to vector<2x96xf32>
      %97 = arith.addf %96, %95 : vector<2x96xf32>
      %98 = arith.divf %96, %97 : vector<2x96xf32>
      %99 = vector.extract_strided_slice %98 {offsets = [0, 0], sizes = [2, 32], strides = [1, 1]} : vector<2x96xf32> to vector<2x32xf32>
      %100 = vector.extract_strided_slice %98 {offsets = [0, 32], sizes = [2, 32], strides = [1, 1]} : vector<2x96xf32> to vector<2x32xf32>
      %101 = vector.extract_strided_slice %98 {offsets = [0, 64], sizes = [2, 32], strides = [1, 1]} : vector<2x96xf32> to vector<2x32xf32>
      %102 = vector.extract_strided_slice %92 {offsets = [0, 96], sizes = [2, 32], strides = [1, 1]} : vector<2x128xf32> to vector<2x32xf32>
      %103 = math.tanh %102 : vector<2x32xf32>
      %104 = arith.mulf %100, %arg15 : vector<2x32xf32>
      %105 = arith.mulf %99, %103 : vector<2x32xf32>
      %106 = arith.addf %104, %105 : vector<2x32xf32>
      %107 = math.tanh %106 : vector<2x32xf32>
      %108 = arith.mulf %101, %107 : vector<2x32xf32>
      %109 = arith.index_cast %49 : i32 to index
      %c0_58 = arith.constant 0 : index
      %c0_59 = arith.constant 0 : index
      %110 = vector.load %arg6[%109, %c0_58, %c0_59] : memref<8x2x32xf32, #tpu.memory_space<vmem>>, vector<1x2x32xf32>
      %111 = vector.shape_cast %110 : vector<1x2x32xf32> to vector<2x32xf32>
      %112 = vector.shape_cast %108 : vector<2x32xf32> to vector<1x2x32xf32>
      tpu.vector_store %arg6[%109, %c0_58, %c0_59], %112 {strides = array<i32>} : memref<8x2x32xf32, #tpu.memory_space<vmem>>, vector<1x2x32xf32>,
      %c2_i32_60 = arith.constant 2 : i32
      %113 = arith.muli %arg9, %c2_i32_60 : i32
      %c1_i32_61 = arith.constant 1 : i32
      %114 = arith.addi %113, %c1_i32_61 : i32
      %115 = arith.index_cast %114 : i32 to index
      %c0_62 = arith.constant 0 : index
      %c0_63 = arith.constant 0 : index
      %116 = vector.load %arg2[%115, %c0_62, %c0_63] : memref<8x2x128xf32, #tpu.memory_space<vmem>>, vector<1x2x128xf32>
      %117 = vector.shape_cast %116 : vector<1x2x128xf32> to vector<2x128xf32>
      %cst_64 = arith.constant dense<0.000000e+00> : vector<2x128xf32>
      %118 = tpu.matmul %70, %3, %cst_64 {dimension_numbers = #tpu.dot_dimension_numbers<[1], [0], [0], [1], [0, 0, 1, 1], [], []>} : vector<2x32xf32>, vector<32x128xf32>, vector<2x128xf32> -> vector<2x128xf32>
      %119 = arith.addf %117, %118 : vector<2x128xf32>
      %120 = vector.extract_strided_slice %119 {offsets = [0, 0], sizes = [2, 96], strides = [1, 1]} : vector<2x128xf32> to vector<2x96xf32>
      %121 = arith.negf %120 : vector<2x96xf32>
      %122 = math.exp %121 : vector<2x96xf32>
      %cst_65 = arith.constant 1.000000e+00 : f32
      %123 = vector.broadcast %cst_65 : f32 to vector<2x96xf32>
      %124 = arith.addf %123, %122 : vector<2x96xf32>
      %125 = arith.divf %123, %124 : vector<2x96xf32>
      %126 = vector.extract_strided_slice %125 {offsets = [0, 0], sizes = [2, 32], strides = [1, 1]} : vector<2x96xf32> to vector<2x32xf32>
      %127 = vector.extract_strided_slice %125 {offsets = [0, 32], sizes = [2, 32], strides = [1, 1]} : vector<2x96xf32> to vector<2x32xf32>
      %128 = vector.extract_strided_slice %125 {offsets = [0, 64], sizes = [2, 32], strides = [1, 1]} : vector<2x96xf32> to vector<2x32xf32>
      %129 = vector.extract_strided_slice %119 {offsets = [0, 96], sizes = [2, 32], strides = [1, 1]} : vector<2x128xf32> to vector<2x32xf32>
      %130 = math.tanh %129 : vector<2x32xf32>
      %131 = arith.mulf %127, %68 : vector<2x32xf32>
      %132 = arith.mulf %126, %130 : vector<2x32xf32>
      %133 = arith.addf %131, %132 : vector<2x32xf32>
      %134 = math.tanh %133 : vector<2x32xf32>
      %135 = arith.mulf %128, %134 : vector<2x32xf32>
      %136 = tpu.concatenate %135, %89 in 1 : vector<2x32xf32>, vector<2x32xf32> -> vector<2x64xf32>
      %cst_66 = arith.constant dense<0.000000e+00> : vector<2x128xf32>
      %137 = tpu.matmul %136, %5, %cst_66 {dimension_numbers = #tpu.dot_dimension_numbers<[1], [0], [0], [1], [0, 0, 1, 1], [], []>} : vector<2x64xf32>, vector<64x128xf32>, vector<2x128xf32> -> vector<2x128xf32>
      %138 = arith.addf %137, %11 : vector<2x128xf32>
      %139 = vector.extract_strided_slice %138 {offsets = [0, 0], sizes = [2, 96], strides = [1, 1]} : vector<2x128xf32> to vector<2x96xf32>
      %140 = arith.negf %139 : vector<2x96xf32>
      %141 = math.exp %140 : vector<2x96xf32>
      %cst_67 = arith.constant 1.000000e+00 : f32
      %142 = vector.broadcast %cst_67 : f32 to vector<2x96xf32>
      %143 = arith.addf %142, %141 : vector<2x96xf32>
      %144 = arith.divf %142, %143 : vector<2x96xf32>
      %145 = vector.extract_strided_slice %144 {offsets = [0, 0], sizes = [2, 32], strides = [1, 1]} : vector<2x96xf32> to vector<2x32xf32>
      %146 = vector.extract_strided_slice %144 {offsets = [0, 32], sizes = [2, 32], strides = [1, 1]} : vector<2x96xf32> to vector<2x32xf32>
      %147 = vector.extract_strided_slice %144 {offsets = [0, 64], sizes = [2, 32], strides = [1, 1]} : vector<2x96xf32> to vector<2x32xf32>
      %148 = vector.extract_strided_slice %138 {offsets = [0, 96], sizes = [2, 32], strides = [1, 1]} : vector<2x128xf32> to vector<2x32xf32>
      %149 = math.tanh %148 : vector<2x32xf32>
      %150 = arith.mulf %146, %87 : vector<2x32xf32>
      %151 = arith.mulf %145, %149 : vector<2x32xf32>
      %152 = arith.addf %150, %151 : vector<2x32xf32>
      %153 = math.tanh %152 : vector<2x32xf32>
      %154 = arith.mulf %147, %153 : vector<2x32xf32>
      %155 = tpu.concatenate %154, %108 in 1 : vector<2x32xf32>, vector<2x32xf32> -> vector<2x64xf32>
      %cst_68 = arith.constant dense<0.000000e+00> : vector<2x128xf32>
      %156 = tpu.matmul %155, %7, %cst_68 {dimension_numbers = #tpu.dot_dimension_numbers<[1], [0], [0], [1], [0, 0, 1, 1], [], []>} : vector<2x64xf32>, vector<64x128xf32>, vector<2x128xf32> -> vector<2x128xf32>
      %157 = arith.addf %156, %15 : vector<2x128xf32>
      %158 = vector.extract_strided_slice %157 {offsets = [0, 0], sizes = [2, 96], strides = [1, 1]} : vector<2x128xf32> to vector<2x96xf32>
      %159 = arith.negf %158 : vector<2x96xf32>
      %160 = math.exp %159 : vector<2x96xf32>
      %cst_69 = arith.constant 1.000000e+00 : f32
      %161 = vector.broadcast %cst_69 : f32 to vector<2x96xf32>
      %162 = arith.addf %161, %160 : vector<2x96xf32>
      %163 = arith.divf %161, %162 : vector<2x96xf32>
      %164 = vector.extract_strided_slice %163 {offsets = [0, 0], sizes = [2, 32], strides = [1, 1]} : vector<2x96xf32> to vector<2x32xf32>
      %165 = vector.extract_strided_slice %163 {offsets = [0, 32], sizes = [2, 32], strides = [1, 1]} : vector<2x96xf32> to vector<2x32xf32>
      %166 = vector.extract_strided_slice %163 {offsets = [0, 64], sizes = [2, 32], strides = [1, 1]} : vector<2x96xf32> to vector<2x32xf32>
      %167 = vector.extract_strided_slice %157 {offsets = [0, 96], sizes = [2, 32], strides = [1, 1]} : vector<2x128xf32> to vector<2x32xf32>
      %168 = math.tanh %167 : vector<2x32xf32>
      %169 = arith.mulf %165, %106 : vector<2x32xf32>
      %170 = arith.mulf %164, %168 : vector<2x32xf32>
      %171 = arith.addf %169, %170 : vector<2x32xf32>
      %172 = math.tanh %171 : vector<2x32xf32>
      %173 = arith.mulf %166, %172 : vector<2x32xf32>
      %174 = arith.index_cast %114 : i32 to index
      %c0_70 = arith.constant 0 : index
      %c0_71 = arith.constant 0 : index
      %175 = vector.load %arg6[%174, %c0_70, %c0_71] : memref<8x2x32xf32, #tpu.memory_space<vmem>>, vector<1x2x32xf32>
      %176 = vector.shape_cast %175 : vector<1x2x32xf32> to vector<2x32xf32>
      %177 = vector.shape_cast %173 : vector<2x32xf32> to vector<1x2x32xf32>
      tpu.vector_store %arg6[%174, %c0_70, %c0_71], %177 {strides = array<i32>} : memref<8x2x32xf32, #tpu.memory_space<vmem>>, vector<1x2x32xf32>,
      scf.yield %135, %154, %173, %133, %152, %171 : vector<2x32xf32>, vector<2x32xf32>, vector<2x32xf32>, vector<2x32xf32>, vector<2x32xf32>, vector<2x32xf32>
    }
    %c4_i32_31 = arith.constant 4 : i32
    %c0_32 = arith.constant 0 : index
    %c0_33 = arith.constant 0 : index
    %c0_34 = arith.constant 0 : index
    %30 = vector.load %arg7[%c0_32, %c0_33, %c0_34] : memref<3x2x32xf32, #tpu.memory_space<vmem>>, vector<1x2x32xf32>
    %31 = vector.shape_cast %30 : vector<1x2x32xf32> to vector<2x32xf32>
    %32 = vector.shape_cast %29#0 : vector<2x32xf32> to vector<1x2x32xf32>
    tpu.vector_store %arg7[%c0_32, %c0_33, %c0_34], %32 {strides = array<i32>} : memref<3x2x32xf32, #tpu.memory_space<vmem>>, vector<1x2x32xf32>,
    %c0_35 = arith.constant 0 : index
    %c0_36 = arith.constant 0 : index
    %c0_37 = arith.constant 0 : index
    %33 = vector.load %arg8[%c0_35, %c0_36, %c0_37] : memref<3x2x32xf32, #tpu.memory_space<vmem>>, vector<1x2x32xf32>
    %34 = vector.shape_cast %33 : vector<1x2x32xf32> to vector<2x32xf32>
    %35 = vector.shape_cast %29#3 : vector<2x32xf32> to vector<1x2x32xf32>
    tpu.vector_store %arg8[%c0_35, %c0_36, %c0_37], %35 {strides = array<i32>} : memref<3x2x32xf32, #tpu.memory_space<vmem>>, vector<1x2x32xf32>,
    %c1_38 = arith.constant 1 : index
    %c0_39 = arith.constant 0 : index
    %c0_40 = arith.constant 0 : index
    %36 = vector.load %arg7[%c1_38, %c0_39, %c0_40] : memref<3x2x32xf32, #tpu.memory_space<vmem>>, vector<1x2x32xf32>
    %37 = vector.shape_cast %36 : vector<1x2x32xf32> to vector<2x32xf32>
    %38 = vector.shape_cast %29#1 : vector<2x32xf32> to vector<1x2x32xf32>
    tpu.vector_store %arg7[%c1_38, %c0_39, %c0_40], %38 {strides = array<i32>} : memref<3x2x32xf32, #tpu.memory_space<vmem>>, vector<1x2x32xf32>,
    %c1_41 = arith.constant 1 : index
    %c0_42 = arith.constant 0 : index
    %c0_43 = arith.constant 0 : index
    %39 = vector.load %arg8[%c1_41, %c0_42, %c0_43] : memref<3x2x32xf32, #tpu.memory_space<vmem>>, vector<1x2x32xf32>
    %40 = vector.shape_cast %39 : vector<1x2x32xf32> to vector<2x32xf32>
    %41 = vector.shape_cast %29#4 : vector<2x32xf32> to vector<1x2x32xf32>
    tpu.vector_store %arg8[%c1_41, %c0_42, %c0_43], %41 {strides = array<i32>} : memref<3x2x32xf32, #tpu.memory_space<vmem>>, vector<1x2x32xf32>,
    %c2_44 = arith.constant 2 : index
    %c0_45 = arith.constant 0 : index
    %c0_46 = arith.constant 0 : index
    %42 = vector.load %arg7[%c2_44, %c0_45, %c0_46] : memref<3x2x32xf32, #tpu.memory_space<vmem>>, vector<1x2x32xf32>
    %43 = vector.shape_cast %42 : vector<1x2x32xf32> to vector<2x32xf32>
    %44 = vector.shape_cast %29#2 : vector<2x32xf32> to vector<1x2x32xf32>
    tpu.vector_store %arg7[%c2_44, %c0_45, %c0_46], %44 {strides = array<i32>} : memref<3x2x32xf32, #tpu.memory_space<vmem>>, vector<1x2x32xf32>,
    %c2_47 = arith.constant 2 : index
    %c0_48 = arith.constant 0 : index
    %c0_49 = arith.constant 0 : index
    %45 = vector.load %arg8[%c2_47, %c0_48, %c0_49] : memref<3x2x32xf32, #tpu.memory_space<vmem>>, vector<1x2x32xf32>
    %46 = vector.shape_cast %45 : vector<1x2x32xf32> to vector<2x32xf32>
    %47 = vector.shape_cast %29#5 : vector<2x32xf32> to vector<1x2x32xf32>
    tpu.vector_store %arg8[%c2_47, %c0_48, %c0_49], %47 {strides = array<i32>} : memref<3x2x32xf32, #tpu.memory_space<vmem>>, vector<1x2x32xf32>,
    return
  }
  func.func @transform_0(%arg0: i32, %arg1: i32) -> (i32, i32, i32) {
    %c0_i32 = arith.constant 0 : i32
    %c0_i32_0 = arith.constant 0 : i32
    return %arg1, %arg0, %c0_i32 : i32, i32, i32
  }
  func.func @transform_1(%arg0: i32, %arg1: i32) -> (i32, i32) {
    %c0_i32 = arith.constant 0 : i32
    %c0_i32_0 = arith.constant 0 : i32
    %c0_i32_1 = arith.constant 0 : i32
    return %c0_i32, %c0_i32_0 : i32, i32
  }
  func.func @transform_2(%arg0: i32, %arg1: i32) -> (i32, i32, i32) {
    %c0_i32 = arith.constant 0 : i32
    %c0_i32_0 = arith.constant 0 : i32
    %c0_i32_1 = arith.constant 0 : i32
    %c0_i32_2 = arith.constant 0 : i32
    return %c0_i32, %c0_i32_0, %c0_i32_1 : i32, i32, i32
  }
  func.func @transform_3(%arg0: i32, %arg1: i32) -> (i32, i32, i32) {
    %c0_i32 = arith.constant 0 : i32
    %c0_i32_0 = arith.constant 0 : i32
    %c0_i32_1 = arith.constant 0 : i32
    %c0_i32_2 = arith.constant 0 : i32
    return %c0_i32, %c0_i32_0, %c0_i32_1 : i32, i32, i32
  }
  func.func @transform_4(%arg0: i32, %arg1: i32) -> (i32, i32, i32) {
    %c0_i32 = arith.constant 0 : i32
    %c0_i32_0 = arith.constant 0 : i32
    return %arg1, %arg0, %c0_i32 : i32, i32, i32
  }
}

</mosaic_0001>

<bundles_post_ra>
// kernel: tpu_custom_call.1
= control target key start
LH: loop header
LB: loop body
LE: loop exit
PB: predicated region body
PF: predicated region fallthrough
CT: control target
= control target key end

     0   :  { %9 = vsyncpa [#allocation5], 0  ;;  %s1708_s0 = inlined_call_operand.hbm [shape: f32[8,2,128], index: 0, kind: input, shape index: {}]   ;;  %s1709_s1 = inlined_call_operand.hbm [shape: f32[32,128], index: 1, kind: input, shape index: {}]   ;;  %s1710_s2 = inlined_call_operand.hbm [shape: f32[2,64,128], index: 2, kind: input, shape index: {}]   ;;  %s1711_s3 = inlined_call_operand.vmem [shape: f32[2,1,128], index: 3, kind: input, shape index: {}]   ;;  %s1712_s4 = inlined_call_operand.hbm [shape: f32[8,2,32], index: 4, kind: output, shape index: {}]  }
   0x1   :  { %10 = vsyncpa [#allocation8], 0 }
   0x2   :  { %11 = vsyncpa [#allocation6], 0  ;;  %s1351_s15 = smov [#allocation7]   ;;  %s1201_s19 = scalar_lea.hbm %s1709_s1, 512 }
   0x3   :  { %s29_s16 = sshll.u32 %s1351_s15, 4  ;;  %p1202_p0 = scmp.ne.s32.totalorder %s1709_s1, %s1201_s19  ;;  %s30_s16 = int_to_ptr.vmem [resolvable:$true] %s29_s16 }
   0x4   :  { %p1205_p1 = scmp.lt.u32.totalorder %s1201_s19, %s1709_s1 }
   0x6   :  { %p1207_p2 = pnand %p1205_p1, %p1202_p0 }
   0x8   :  { %1210 = shalt.err (!%p1207_p2)
}
   0x9   :  { %s1211_s24 = scalar_lea.vmem %s30_s16, 512  ;;  %p1216_p4 = scmp.lt.s32.totalorder %s30_s16, %s30_s16 }
   0xa   :  { %p1212_p3 = scmp.ne.s32.totalorder %s30_s16, %s1211_s24  ;;  %p1217_p5 = scmp.lt.s32.totalorder %s1211_s24, %s1211_s24 }
   0xc   :  { %p1218_p6 = por %p1217_p5, %p1216_p4 }
   0xe   :  { %p1219_p7 = pnand %p1218_p6, %p1212_p3 }
  0x10   :  { %1222 = shalt.err (!%p1219_p7)
}
  0x11   :  { %s1352_s25 = smov 128   ;;  %s1353_s26 = smov 8  }
  0x12   :  { %35 = dma.hbm_to_vmem [thread:$0]  %s1709_s1, 512, %s30_s16, [#allocation8], %s1352_s25, %s1352_s25, %s1353_s26  }
  0x13   :  { %s1354_s29 = smov [#allocation4]   ;;  %s1223_s7 = scalar_lea.hbm %s1708_s0, 256 }
  0x14   :  { %s17_s30 = sshll.u32 %s1354_s29, 4  ;;  %p1224_p8 = scmp.ne.s32.totalorder %s1708_s0, %s1223_s7  ;;  %s18_s30 = int_to_ptr.vmem [resolvable:$true] %s17_s30 }
  0x15   :  { %p1227_p9 = scmp.lt.u32.totalorder %s1223_s7, %s1708_s0 }
  0x17   :  { %p1229_p10 = pnand %p1227_p9, %p1224_p8 }
  0x19   :  { %1232 = shalt.err (!%p1229_p10)
}
  0x1a   :  { %s1233_s12 = scalar_lea.vmem %s18_s30, 256  ;;  %p1238_p12 = scmp.lt.s32.totalorder %s18_s30, %s18_s30 }
  0x1b   :  { %p1234_p11 = scmp.ne.s32.totalorder %s18_s30, %s1233_s12  ;;  %p1239_p13 = scmp.lt.s32.totalorder %s1233_s12, %s1233_s12 }
  0x1d   :  { %p1240_p0 = por %p1239_p13, %p1238_p12 }
  0x1f   :  { %p1241_p1 = pnand %p1240_p0, %p1234_p11 }
  0x21   :  { %1244 = shalt.err (!%p1241_p1)
}
  0x22   :  { %s1355_s1 = smov 32   ;;  %s1356_s13 = smov 2  }
  0x23   :  { %23 = dma.hbm_to_vmem [thread:$0]  %s1708_s0, 256, %s18_s30, [#allocation5], %s1355_s1, %s1355_s1, %s1356_s13  }
  0x24   :  { %s1357_s16 = smov [#allocation9]   ;;  %s1245_s20 = scalar_lea.hbm %s1710_s2, 2048 }
  0x25   :  { %s41_s17 = sshll.u32 %s1357_s16, 4  ;;  %p1246_p2 = scmp.ne.s32.totalorder %s1710_s2, %s1245_s20  ;;  %s42_s17 = int_to_ptr.vmem [resolvable:$true] %s41_s17 }
  0x26   :  { %p1249_p3 = scmp.lt.u32.totalorder %s1245_s20, %s1710_s2 }
  0x28   :  { %p1251_p4 = pnand %p1249_p3, %p1246_p2 }
  0x2a   :  { %1254 = shalt.err (!%p1251_p4)
}
  0x2b   :  { %s1255_s27 = scalar_lea.vmem %s42_s17, 2048  ;;  %p1260_p6 = scmp.lt.s32.totalorder %s42_s17, %s42_s17 }
  0x2c   :  { %p1256_p5 = scmp.ne.s32.totalorder %s42_s17, %s1255_s27  ;;  %p1261_p7 = scmp.lt.s32.totalorder %s1255_s27, %s1255_s27 }
  0x2e   :  { %p1262_p8 = por %p1261_p7, %p1260_p6 }
  0x30   :  { %p1263_p9 = pnand %p1262_p8, %p1256_p5 }
  0x32   :  { %1266 = shalt.err (!%p1263_p9)
}
  0x33   :  { %47 = dma.hbm_to_vmem [thread:$0]  %s1710_s2, 2048, %s42_s17, [#allocation8], %s1352_s25, %s1352_s25, %s1353_s26  }
  0x34   :  { %1317 = dma.done.wait [#allocation5], 256  }
  0x35   :  { %1318 = vsyncadd [#allocation5], 4294967040 }
  0x36   :  { %1319 = dma.done.wait [#allocation8], 2560  }
  0x37   :  { %1320 = vsyncadd [#allocation8], 4294964736  ;;  %vm63_vm0 = vcmask 254976   ;;  %v1358_v0 = vmov 0.0   ;;  %v1442_v1 = vld [vmem:[#allocation7] sm:$0xff]  ;;  %v1444_v2 = vld [vmem:[#allocation7 + $0x8] sm:$0xff] }
  0x38   :  { %64 = vst.msk [vmem:[#allocation2] sm:$0x3] %vm63_vm0, %v1358_v0  ;;  %65 = vst.msk [vmem:[#allocation2 + $0x2] sm:$0x3] %vm63_vm0, %v1358_v0  ;;  %v1446_v3 = vld [vmem:[#allocation7 + $0x10] sm:$0xff]  ;;  %v1448_v4 = vld [vmem:[#allocation7 + $0x18] sm:$0xff] }
  0x39   :  { %66 = vst.msk [vmem:[#allocation2 + $0x4] sm:$0x3] %vm63_vm0, %v1358_v0  ;;  %67 = vst.msk [vmem:[#allocation3] sm:$0x3] %vm63_vm0, %v1358_v0  ;;  %v1450_v5 = vld [vmem:[#allocation9] sm:$0xff]  ;;  %v1452_v6 = vld [vmem:[#allocation9 + $0x8] sm:$0xff] }
  0x3a   :  { %68 = vst.msk [vmem:[#allocation3 + $0x2] sm:$0x3] %vm63_vm0, %v1358_v0  ;;  %69 = vst.msk [vmem:[#allocation3 + $0x4] sm:$0x3] %vm63_vm0, %v1358_v0  ;;  %v1454_v7 = vld [vmem:[#allocation9 + $0x10] sm:$0xff]  ;;  %v1456_v8 = vld [vmem:[#allocation9 + $0x18] sm:$0xff] }
  0x3b   :  { %v1458_v9 = vld [vmem:[#allocation9 + $0x20] sm:$0xff]  ;;  %v1460_v10 = vld [vmem:[#allocation9 + $0x28] sm:$0xff]  ;;  %v1462_v11 = vld [vmem:[#allocation9 + $0x30] sm:$0xff] }
  0x3c   :  { %v1464_v12 = vld [vmem:[#allocation9 + $0x38] sm:$0xff]  ;;  %v1466_v13 = vld [vmem:[#allocation9 + $0x40] sm:$0xff]  ;;  %v1468_v14 = vld [vmem:[#allocation9 + $0x48] sm:$0xff] }
  0x3d   :  { %v1470_v15 = vld [vmem:[#allocation9 + $0x50] sm:$0xff]  ;;  %v1472_v16 = vld [vmem:[#allocation9 + $0x58] sm:$0xff]  ;;  %v1474_v17 = vld [vmem:[#allocation9 + $0x60] sm:$0xff] }
  0x3e   :  { %v1476_v18 = vld [vmem:[#allocation9 + $0x68] sm:$0xff]  ;;  %v1478_v19 = vld [vmem:[#allocation9 + $0x70] sm:$0xff]  ;;  %v1480_v20 = vld [vmem:[#allocation9 + $0x78] sm:$0xff] }
  0x3f   :  { %v1485_v21 = vld [vmem:[%s1711_s3] ss:$0 sm:$0xff]  ;;  %v1490_v22 = vld [vmem:[%s1711_s3 + $0x1] ss:$0 sm:$0xff]  ;;  %v108_v24 = vld [vmem:[#allocation2 + $0x2] sm:$0x3]  }
  0x40   :  { %v106_v23 = vld [vmem:[#allocation2] sm:$0x3]   ;;  %v110_v25 = vld [vmem:[#allocation2 + $0x4] sm:$0x3]   ;;  %v111_v26 = vld [vmem:[#allocation3] sm:$0x3]  }
  0x41   :  { %v113_v27 = vld [vmem:[#allocation3 + $0x2] sm:$0x3]   ;;  %v115_v28 = vld [vmem:[#allocation3 + $0x4] sm:$0x3]   ;;  %s1504_s3 = smov 0  }
  0x42 LB: > { %v1523_v29 = vpack.c.bf16 %v1444_v2, %v1442_v1  ;;  %v1359_v30 = vmov 0.0|0.0   ;;  %v1026_v31 = vpack.c.bf16 %v1448_v4, %v1446_v3  ;;  %vm1360_vm1 = vmmov 0   ;;  %s875_s30 = sshll.u32 %s1349_s3, 2  ;;  %s1362_s6 = smov 32   ;;  %s1349_s3 = sphi %s1504_s3, %s121_s3   ;;  %v1345_v23 = vphi %v106_v23, %v1719_v23   ;;  %v1341_v24 = vphi %v108_v24, %v1718_v24   ;;  %v1337_v25 = vphi %v110_v25, %v1717_v25   ;;  %v1333_v26 = vphi %v111_v26, %v1716_v26   ;;  %v1329_v27 = vphi %v113_v27, %v1715_v27   ;;  %v1325_v28 = vphi %v115_v28, %v1714_v28  }
  0x43   : > { %1022 = vmatprep.subr.bf16.mxu0 %v1359_v30  ;;  %1028 = vmatprep.subr.bf16.mxu1 %v1359_v30  ;;  %v1361_v32 = vmov 0.0   ;;  %vm132_vm2 = vcmask 261120   ;;  %s1542_s5 = scalar_lea.vmem [#allocation4], %s875_s30  ;;  %v1553_v48 = vpack.c.bf16 %v1452_v6, %v1450_v5  ;;  %v1558_v49 = vpack.c.bf16 %v1456_v8, %v1454_v7  ;;  %s1363_s7 = smov 64  }
  0x44   : > { %1024 = vmatpush3.bf16.msra.mxu0 %v1523_v29  ;;  %932 = vmatprep.mubr.msk.f32.mxu0 %vm1360_vm1, %v1361_v32  ;;  %v131_v33 = vld [vmem:[%s1542_s5] sm:$0x3]  ;;  %v1564_v50 = vpack.c.bf16 %v1460_v10, %v1458_v9  ;;  %v1570_v52 = vpack.c.bf16 %v1464_v12, %v1462_v11  ;;  %vm244_vm3 = vcmask 523264   ;;  %v865_v61 = vld [vmem:[%s1542_s5 + $0x2] sm:$0x3]  ;;  %s1364_s8 = smov 96  }
  0x45   : > { %1025 = vmatprep.subr.bf16.mxu0 %v1359_v30  ;;  %951 = vmatprep.mubr.msk.f32.mxu1 %vm1360_vm1, %v1361_v32  ;;  %s460_s9 = scalar_lea.vmem [#allocation10], %s875_s30  ;;  %s121_s3 = sadd.s32 1, %s1349_s3  }
  0x46   : > { %1030 = vmatpush3.bf16.msra.mxu1 %v1553_v48  ;;  %p118_p10 = scmp.ge.s32.totalorder %s121_s3, 4  }
  0x47   : > { %1031 = vmatprep.subr.bf16.mxu1 %v1359_v30  ;;  %s1365_s10 = smov (%p118_p10), [#allocation10]  }
  0x48   : > { %1027 = vmatpush3.bf16.msra.mxu0 %v1026_v31  ;;  %s804_s11 = sshll.u32 (%p118_p10), %s1365_s10, 4  ;;  %s805_s11 = int_to_ptr.vmem [resolvable:$true] %s804_s11 }
  0x49   : > { %1040 = vmatprep.subr.bf16.mxu0 %v1359_v30  ;;  %s1267_s12 = scalar_lea.vmem (%p118_p10), %s805_s11, 256  ;;  %p1272_p12 = scmp.lt.s32.totalorder (%p118_p10), %s805_s11, %s805_s11 }
  0x4a   : > { %1033 = vmatpush3.bf16.msra.mxu1 %v1558_v49  ;;  %p1268_p11 = scmp.ne.s32.totalorder (%p118_p10), %s805_s11, %s1267_s12  ;;  %p1273_p13 = scmp.lt.s32.totalorder (%p118_p10), %s1267_s12, %s1267_s12 }
  0x4b   : > { %933 = vmatmul.mubr.msk.f32.vlgmr.msra.gmra.mrb[0].mxu0 %vm132_vm2, %v1345_v23  ;;  %1034 = vmatprep.subr.bf16.mxu1 %v1359_v30 }
  0x4c   : > { %970 = vmatprep.mubr.msk.f32.mxu0 %vm1360_vm1, %v1361_v32  ;;  %p1274_p0 = por (%p118_p10), %p1273_p13, %p1272_p12 }
  0x4e   : > { %1036 = vmatpush3.bf16.msra.mxu1 %v1564_v50  ;;  %p1275_p1 = pnand (%p118_p10), %p1274_p0, %p1268_p11 }
  0x4f   : > { %1037 = vmatprep.subr.bf16.mxu1 %v1359_v30 }
  0x52   : > { %1039 = vmatpush3.bf16.msra.mxu1 %v1570_v52 }
  0x53   : > { %1052 = vmatprep.subr.bf16.mxu1 %v1359_v30 }
 0x11e   : > { %v202_v34 = vpop.f32.mrb[0].mxu0 }
 0x11f   : > { %v206_v35 = vadd.f32 %v202_v34, %v131_v33  ;;  %v934_v36 = vpop.f32.mrb[1].mxu0 }
 0x121   : > { %1153 = vtanh.f32 %v206_v35  ;;  %v858_v38 = vmul.f32 -1.442695, %v206_v35 }
 0x123   : > { %1155 = vpow2.f32 %v858_v38 }
 0x12b   : > { %v1154_v37 = vpop.eup %1153 }
 0x12c   : > { %220 = vrot.lane.b32.xlu0 %v1154_v37, %s1362_s6 }
 0x12d   : > { %v1156_v39 = vpop.eup %1155 }
 0x12e   : > { %v210_v40 = vadd.f32 1.0, %v1156_v39 }
 0x130   : > { %215 = vrot.lane.b32.xlu0 %v1333_v26, %s1362_s6  ;;  %1157 = vrcp.f32 %v210_v40 }
 0x13a   : > { %v1158_v41 = vpop.eup %1157 }
 0x19e   : > { %v221_v42 = vpop.permute.xlu0 %220 }
 0x19f   : > { %v223_v43 = vmul.f32 %v1158_v41, %v221_v42 }
 0x1a1   : > { %225 = vrot.lane.b32.xlu1 %v223_v43, %s1362_s6 }
 0x1a2   : > { %v216_v44 = vpop.permute.xlu0 %215 }
 0x1a3   : > { %v218_v45 = vmul.f32 %v1158_v41, %v216_v44 }
 0x213   : > { %v226_v46 = vpop.permute.xlu1 %225 }
 0x214   : > { %v1548_v47 = vadd.f32 %v226_v46, %v218_v45 }
 0x216   : > { %1159 = vtanh.f32 %v1548_v47 }
 0x220   : > { %v1160_v51 = vpop.eup %1159 }
 0x221   : > { %231 = vrot.lane.b32.xlu1 %v1160_v51, %s1362_s6 }
 0x225   : > { %240 = vrot.lane.b32.xlu1 %v1341_v24, %s1362_s6 }
 0x293   : > { %v232_v53 = vpop.permute.xlu1 %231 }
 0x294   : > { %v234_v54 = vmul.f32 %v1158_v41, %v232_v53  ;;  %v1041_v53 = vpack.c.bf16 %v1468_v14, %v1466_v13 }
 0x296   : > { %236 = vrot.lane.b32.xlu0 %v234_v54, %s1363_s7  ;;  %1042 = vmatpush3.bf16.msra.mxu0 %v1041_v53 }
 0x297   : > { %v241_v55 = vpop.permute.xlu1 %240  ;;  %1043 = vmatprep.subr.bf16.mxu0 %v1359_v30 }
 0x308   : > { %v237_v56 = vpop.permute.xlu0 %236 }
 0x309   : > { %v243_v57 = vsel %vm132_vm2, %v237_v56, %v241_v55  ;;  %v1044_v55 = vpack.c.bf16 %v1472_v16, %v1470_v15 }
 0x30a   : > { %952 = vmatmul.mubr.msk.f32.vlgmr.msra.gmra.mrb[0].mxu1 %vm244_vm3, %v243_v57  ;;  %v1050_v57 = vpack.c.bf16 %v1480_v20, %v1478_v19 }
 0x30b   : > { %1054 = vmatpush3.bf16.msra.mxu1 %v1523_v29  ;;  %981 = vmatprep.mubr.msk.f32.mxu1 %vm1360_vm1, %v1361_v32 }
 0x30c   : > { %1055 = vmatprep.subr.bf16.mxu1 %v1359_v30  ;;  %1045 = vmatpush3.bf16.msra.mxu0 %v1044_v55 }
 0x30d   : > { %1046 = vmatprep.subr.bf16.mxu0 %v1359_v30 }
 0x30f   : > { %1057 = vmatpush3.bf16.msra.mxu1 %v1026_v31 }
 0x310   : > { %1070 = vmatprep.subr.bf16.mxu1 %v1359_v30 }
 0x312   : > { %982 = vmatmul.mubr.msk.f32.vlgmr.msra.gmra.mrb[2].mxu1 %vm132_vm2, %v237_v56 }
 0x313   : > { %1019 = vmatprep.mubr.msk.f32.mxu1 %vm1360_vm1, %v1361_v32  ;;  %1072 = vmatpush3.bf16.msra.mxu1 %v1041_v53 }
 0x314   : > { %1073 = vmatprep.subr.bf16.mxu1 %v1359_v30 }
 0x317   : > { %1075 = vmatpush3.bf16.msra.mxu1 %v1044_v55 }
 0x318   : > { %1076 = vmatprep.subr.bf16.mxu1 %v1359_v30 }
 0x3dd   : > { %v314_v58 = vpop.f32.mrb[0].mxu1 }
 0x3de   : > { %v315_v59 = vadd.f32 %v1485_v21, %v314_v58  ;;  %v953_v60 = vpop.f32.mrb[1].mxu1 }
 0x3e0   : > { %1161 = vtanh.f32 %v315_v59  ;;  %v860_v26 = vmul.f32 -1.442695, %v315_v59 }
 0x3e5   : > { %v535_v62 = vpop.f32.mrb[2].mxu1 }
 0x3e6   : > { %v539_v63 = vadd.f32 %v865_v61, %v535_v62  ;;  %v983_v0 = vpop.f32.mrb[3].mxu1 }
 0x3e8   : > { %1163 = vtanh.f32 %v539_v63  ;;  %v867_v29 = vmul.f32 -1.442695, %v539_v63 }
 0x3e9   : > { %1165 = vpow2.f32 %v860_v26 }
 0x3ea   : > { %v1162_v23 = vpop.eup %1161  ;;  %1167 = vpow2.f32 %v867_v29 }
 0x3eb   : > { %331 = vrot.lane.b32.xlu0 %v1162_v23, %s1362_s6 }
 0x3ef   : > { %326 = vrot.lane.b32.xlu0 %v1329_v27, %s1362_s6 }
 0x3f2   : > { %v1164_v24 = vpop.eup %1163 }
 0x3f3   : > { %549 = vrot.lane.b32.xlu1 %v1164_v24, %s1362_s6  ;;  %v1166_v31 = vpop.eup %1165 }
 0x3f4   : > { %v321_v33 = vadd.f32 1.0, %v1166_v31  ;;  %v1168_v34 = vpop.eup %1167 }
 0x3f5   : > { %v543_v35 = vadd.f32 1.0, %v1168_v34 }
 0x3f6   : > { %1169 = vrcp.f32 %v321_v33 }
 0x3f7   : > { %1171 = vrcp.f32 %v543_v35 }
 0x400   : > { %v1170_v36 = vpop.eup %1169 }
 0x401   : > { %v1172_v39 = vpop.eup %1171 }
 0x402   : > { %v547_v45 = vmul.f32 %v1172_v39, %v1548_v47  ;;  %v1047_v47 = vpack.c.bf16 %v1476_v18, %v1474_v17 }
 0x404   : > { %1048 = vmatpush3.bf16.msra.mxu0 %v1047_v47  ;;  %1078 = vmatpush3.bf16.msra.mxu1 %v1047_v47 }
 0x405   : > { %1049 = vmatprep.subr.bf16.mxu0 %v1359_v30  ;;  %1079 = vmatprep.subr.bf16.mxu1 %v1359_v30 }
 0x408   : > { %1051 = vmatpush3.bf16.msra.mxu0 %v1050_v57  ;;  %1081 = vmatpush3.bf16.msra.mxu1 %v1050_v57 }
 0x409   : > { %1058 = vmatprep.subr.bf16.mxu0 %v1359_v30 }
 0x45d   : > { %v332_v37 = vpop.permute.xlu0 %331 }
 0x45e   : > { %v334_v38 = vmul.f32 %v1170_v36, %v332_v37 }
 0x460   : > { %336 = vrot.lane.b32.xlu1 %v334_v38, %s1362_s6 }
 0x461   : > { %v327_v41 = vpop.permute.xlu0 %326 }
 0x462   : > { %v329_v42 = vmul.f32 %v1170_v36, %v327_v41 }
 0x465   : > { %v550_v27 = vpop.permute.xlu1 %549 }
 0x466   : > { %v552_v40 = vmul.f32 %v1172_v39, %v550_v27 }
 0x468   : > { %554 = vrot.lane.b32.xlu0 %v552_v40, %s1362_s6 }
 0x4d2   : > { %v337_v43 = vpop.permute.xlu1 %336 }
 0x4d3   : > { %v1596_v44 = vadd.f32 %v337_v43, %v329_v42 }
 0x4d5   : > { %1173 = vtanh.f32 %v1596_v44 }
 0x4da   : > { %v555_v46 = vpop.permute.xlu0 %554 }
 0x4db   : > { %v1600_v51 = vadd.f32 %v555_v46, %v547_v45 }
 0x4dd   : > { %1175 = vtanh.f32 %v1600_v51 }
 0x4df   : > { %v1174_v54 = vpop.eup %1173 }
 0x4e0   : > { %342 = vrot.lane.b32.xlu1 %v1174_v54, %s1362_s6 }
 0x4e7   : > { %v1176_v56 = vpop.eup %1175 }
 0x4e8   : > { %560 = vrot.lane.b32.xlu0 %v1176_v56, %s1362_s6 }
 0x4ec   : > { %351 = vrot.lane.b32.xlu0 %v1337_v25, %s1362_s6 }
 0x552   : > { %v343_v58 = vpop.permute.xlu1 %342 }
 0x553   : > { %v345_v59 = vmul.f32 %v1170_v36, %v343_v58 }
 0x555   : > { %347 = vrot.lane.b32.xlu1 %v345_v59, %s1363_s7  ;;  %568 = vrot.lane.b32.xlu0 %v345_v59, %s1364_s8 }
 0x55a   : > { %v561_v60 = vpop.permute.xlu0 %560 }
 0x55b   : > { %v563_v61 = vmul.f32 %v1172_v39, %v561_v60 }
 0x55d   : > { %565 = vrot.lane.b32.xlu1 %v563_v61, %s1363_s7 }
 0x55e   : > { %v352_v62 = vpop.permute.xlu0 %351 }
 0x5c7   : > { %v348_v63 = vpop.permute.xlu1 %347  ;;  %v569_v25 = vpop.permute.xlu0 %568 }
 0x5c8   : > { %v354_v0 = vsel %vm132_vm2, %v348_v63, %v352_v62 }
 0x5c9   : > { %971 = vmatmul.mubr.msk.f32.vlgmr.msra.gmra.mrb[2].mxu0 %vm244_vm3, %v354_v0 }
 0x5ca   : > { %1060 = vmatpush3.bf16.msra.mxu0 %v1553_v48  ;;  %1000 = vmatprep.mubr.msk.f32.mxu0 %vm1360_vm1, %v1361_v32 }
 0x5cb   : > { %1061 = vmatprep.subr.bf16.mxu0 %v1359_v30 }
 0x5ce   : > { %1063 = vmatpush3.bf16.msra.mxu0 %v1558_v49 }
 0x5cf   : > { %1064 = vmatprep.subr.bf16.mxu0 %v1359_v30  ;;  %v1635_v23 = vpop.permute.xlu1 %565  }
 0x5d0   : > { %v1713_v29 = vmov %v1635_v23 }
 0x5d1   : > { %v571_v48 = vsel %vm132_vm2, %v1713_v29, %v569_v25  ;;  %793 = vst.msk [vmem:[#allocation2] sm:$0x3] (%p118_p10), %vm63_vm0, %v1713_v29 }
 0x5d2   : > { %1066 = vmatpush3.bf16.msra.mxu0 %v1564_v50 }
 0x5d3   : > { %1067 = vmatprep.subr.bf16.mxu0 %v1359_v30 }
 0x5d6   : > { %1069 = vmatpush3.bf16.msra.mxu0 %v1570_v52 }
 0x5d9   : > { %1001 = vmatmul.mubr.msk.f32.vlgmr.msra.gmra.mrb[4].mxu0 %vm244_vm3, %v571_v48 }
 0x69c   : > { %v424_v32 = vpop.f32.mrb[2].mxu0 }
 0x69d   : > { %v425_v24 = vadd.f32 %v1490_v22, %v424_v32  ;;  %v972_v49 = vpop.f32.mrb[3].mxu0 }
 0x69f   : > { %1177 = vtanh.f32 %v425_v24  ;;  %v862_v31 = vmul.f32 -1.442695, %v425_v24 }
 0x6a9   : > { %v1178_v26 = vpop.eup %1177 }
 0x6aa   : > { %441 = vrot.lane.b32.xlu1 %v1178_v26, %s1362_s6 }
 0x6ac   : > { %v641_v50 = vpop.f32.mrb[4].mxu0 }
 0x6ad   : > { %v642_v30 = vadd.f32 %v1485_v21, %v641_v50  ;;  %v1002_v23 = vpop.f32.mrb[5].mxu0 }
 0x6ae   : > { %436 = vrot.lane.b32.xlu1 %v1325_v28, %s1362_s6 }
 0x6af   : > { %1179 = vtanh.f32 %v642_v30  ;;  %v869_v34 = vmul.f32 -1.442695, %v642_v30 }
 0x6b0   : > { %1181 = vpow2.f32 %v862_v31 }
 0x6b1   : > { %1183 = vpow2.f32 %v869_v34 }
 0x6b9   : > { %v1180_v52 = vpop.eup %1179 }
 0x6ba   : > { %654 = vrot.lane.b32.xlu0 %v1180_v52, %s1362_s6  ;;  %v1182_v33 = vpop.eup %1181 }
 0x6bb   : > { %v431_v35 = vadd.f32 1.0, %v1182_v33  ;;  %v1184_v36 = vpop.eup %1183 }
 0x6bc   : > { %v648_v27 = vadd.f32 1.0, %v1184_v36 }
 0x6bd   : > { %1185 = vrcp.f32 %v431_v35 }
 0x6be   : > { %1187 = vrcp.f32 %v648_v27 }
 0x6c7   : > { %v1186_v37 = vpop.eup %1185 }
 0x6c8   : > { %v1188_v28 = vpop.eup %1187 }
 0x6c9   : > { %v652_v54 = vmul.f32 %v1188_v28, %v1596_v44 }
 0x71c   : > { %v442_v38 = vpop.permute.xlu1 %441 }
 0x71d   : > { %v444_v39 = vmul.f32 %v1186_v37, %v442_v38 }
 0x71f   : > { %446 = vrot.lane.b32.xlu0 %v444_v39, %s1362_s6 }
 0x720   : > { %v437_v42 = vpop.permute.xlu1 %436 }
 0x721   : > { %v439_v43 = vmul.f32 %v1186_v37, %v437_v42 }
 0x72c   : > { %v655_v40 = vpop.permute.xlu0 %654 }
 0x72d   : > { %v657_v41 = vmul.f32 %v1188_v28, %v655_v40 }
 0x72f   : > { %659 = vrot.lane.b32.xlu1 %v657_v41, %s1362_s6 }
 0x791   : > { %v447_v45 = vpop.permute.xlu0 %446 }
 0x792   : > { %v449_v46 = vadd.f32 %v447_v45, %v439_v43 }
 0x794   : > { %1189 = vtanh.f32 %v449_v46 }
 0x79e   : > { %v1190_v53 = vpop.eup %1189 }
 0x79f   : > { %452 = vrot.lane.b32.xlu0 %v1190_v53, %s1362_s6 }
 0x7a1   : > { %v660_v55 = vpop.permute.xlu1 %659 }
 0x7a2   : > { %v662_v47 = vadd.f32 %v660_v55, %v652_v54 }
 0x7a4   : > { %1191 = vtanh.f32 %v662_v47 }
 0x7ae   : > { %v1192_v56 = vpop.eup %1191 }
 0x7af   : > { %665 = vrot.lane.b32.xlu1 %v1192_v56, %s1362_s6 }
 0x811   : > { %v453_v57 = vpop.permute.xlu0 %452 }
 0x812   : > { %v455_v58 = vmul.f32 %v1186_v37, %v453_v57 }
 0x814   : > { %673 = vrot.lane.b32.xlu1 %v455_v58, %s1364_s8 }
 0x821   : > { %v666_v59 = vpop.permute.xlu1 %665 }
 0x822   : > { %v668_v60 = vmul.f32 %v1188_v28, %v666_v59 }
 0x824   : > { %670 = vrot.lane.b32.xlu0 %v668_v60, %s1363_s7 }
 0x886   : > { %v674_v61 = vpop.permute.xlu1 %673 }
 0x896   : > { %v671_v62 = vpop.permute.xlu0 %670  }
 0x897   : > { %v676_v63 = vsel %vm132_vm2, %v671_v62, %v674_v61  ;;  %795 = vst.msk [vmem:[#allocation2 + $0x2] sm:$0x3] (%p118_p10), %vm63_vm0, %v671_v62 }
 0x898   : > { %1020 = vmatmul.mubr.msk.f32.vlgmr.msra.gmra.mrb[4].mxu1 %vm244_vm3, %v676_v63 }
 0x96b   : > { %v746_v44 = vpop.f32.mrb[4].mxu1 }
 0x96c   : > { %v747_v0 = vadd.f32 %v1490_v22, %v746_v44  ;;  %v1021_v25 = vpop.f32.mrb[5].mxu1 }
 0x96e   : > { %1193 = vtanh.f32 %v747_v0  ;;  %v871_v32 = vmul.f32 -1.442695, %v747_v0 }
 0x970   : > { %1195 = vpow2.f32 %v871_v32 }
 0x978   : > { %v1194_v48 = vpop.eup %1193 }
 0x979   : > { %759 = vrot.lane.b32.xlu0 %v1194_v48, %s1362_s6 }
 0x97a   : > { %v1196_v24 = vpop.eup %1195 }
 0x97b   : > { %v753_v49 = vadd.f32 1.0, %v1196_v24  ;;  %v1718_v24 = vmov %v671_v62 }
 0x97d   : > { %1197 = vrcp.f32 %v753_v49 }
 0x987   : > { %v1198_v26 = vpop.eup %1197 }
 0x988   : > { %v757_v23 = vmul.f32 %v1198_v26, %v449_v46 }
 0x9eb   : > { %v760_v50 = vpop.permute.xlu0 %759 }
 0x9ec   : > { %v762_v30 = vmul.f32 %v1198_v26, %v760_v50 }
 0x9ee   : > { %764 = vrot.lane.b32.xlu1 %v762_v30, %s1362_s6 }
 0x9f2   : > { %457 = vrot.lane.b32.xlu1 %v455_v58, %s1363_s7 }
 0x9f6   : > { %781 = vrot.lane.b32.xlu1 %v1600_v51, %s1364_s8 }
 0xa60   : > { %v765_v52 = vpop.permute.xlu1 %764 }
 0xa61   : > { %v767_v31 = vadd.f32 %v765_v52, %v757_v23  ;;  %v1719_v23 = vmov %v1713_v29 }
 0xa63   : > { %1199 = vtanh.f32 %v767_v31  ;;  %789 = vrot.lane.b32.xlu1 %v767_v31, %s1364_s8 }
 0xa64   : > { %v458_v33 = vpop.permute.xlu1 %457 }
 0xa65   : > { %462 = vst.msk [vmem:[%s460_s9] sm:$0x3] %vm63_vm0, %v458_v33 }
 0xa68   : > { %v782_v34 = vpop.permute.xlu1 %781  }
 0xa69   :  { %794 = vst.msk [vmem:[#allocation3] sm:$0x3] (%p118_p10), %vm63_vm0, %v782_v34 }
 0xa6d   : > { %v1200_v35 = vpop.eup %1199 }
 0xa6e   : > { %770 = vrot.lane.b32.xlu0 %v1200_v35, %s1362_s6 }
 0xad5   : > { %v790_v36 = vpop.permute.xlu1 %789  }
 0xad6   : > { %v1714_v28 = vmov %v790_v36  ;;  %798 = vst.msk [vmem:[#allocation3 + $0x4] sm:$0x3] (%p118_p10), %vm63_vm0, %v790_v36 }
 0xae0   : > { %v771_v37 = vpop.permute.xlu0 %770 }
 0xae1   : > { %v773_v38 = vmul.f32 %v1198_v26, %v771_v37  ;;  %v1716_v26 = vmov %v782_v34 }
 0xae3   : > { %775 = vrot.lane.b32.xlu0 %v773_v38, %s1363_s7 }
 0xae7   : > { %785 = vrot.lane.b32.xlu0 %v662_v47, %s1364_s8 }
 0xb54   :  { %120 = sbr.rel (!%p118_p10) target bundleno = 66 (0x42), region = 69 }
 0xb55   : > { %v776_v51 = vpop.permute.xlu0 %775  }
 0xb56   : > { %874 = vst.msk [vmem:[%s460_s9 + $0x2] sm:$0x3] %vm63_vm0, %v776_v51  ;;  %v1717_v25 = vmov %v776_v51  ;;  %797 = vst.msk [vmem:[#allocation2 + $0x4] sm:$0x3] (%p118_p10), %vm63_vm0, %v776_v51 }
 0xb59   : > { %v786_v39 = vpop.permute.xlu0 %785  }
 0xb5a   : > { %v1715_v27 = vmov %v786_v39  ;;  %796 = vst.msk [vmem:[#allocation3 + $0x2] sm:$0x3] (%p118_p10), %vm63_vm0, %v786_v39 }
 0xb5b   :  { %1278 = shalt.err (!%p1275_p1)
}
 0xb5c   :  { %s1279_s16 = scalar_lea.hbm %s1712_s4, 256 }
 0xb5d   :  { %p1280_p2 = scmp.ne.s32.totalorder %s1712_s4, %s1279_s16  ;;  %p1283_p3 = scmp.lt.u32.totalorder %s1279_s16, %s1712_s4 }
 0xb5f   :  { %p1285_p4 = pnand %p1283_p3, %p1280_p2 }
 0xb61   :  { %1288 = shalt.err (!%p1285_p4)
}
 0xb62   :  { %810 = dma.vmem_to_hbm [thread:$0]  %s805_s11, 256, %s1712_s4, [#allocation6], %s1355_s1, %s1355_s1, %s1356_s13  }
 0xb63   :  { %1321 = dma.done.wait [#allocation6], 256  }
 0xb64   :  { %1322 = vsyncadd [#allocation6], 4294967040 }
 0xb65   :  { %814 = vsyncpa [#allocation5], 1 }
 0xb66   :  { %815 = vsyncpa [#allocation8], 1 }
 0xb67   :  { %816 = vsyncpa [#allocation6], 1 }

</bundles_post_ra>
